<compile_context>
chip_gen: v5e
topology: v5e:2x2
jax: 0.10.0
libtpu: 0.0.40
codegen_flags: <defaults>
</compile_context>

<pallas_src>
import functools

import jax
import jax.numpy as jnp
from jax import lax
from jax.experimental import pallas as pl
from jax.experimental.pallas import tpu as pltpu


def basic_block_kernel(xp_ref, w1_ref, w2_ref, bn_ref, o_ref, *, H, NB, WC):
    # xp_ref : (NB, H+2, WC) f32  H-padded input slab (rows 0 and H+1 are zero),
    #                             NHWC lane-packed (WC = W*Cin); also the residual.
    # w1_ref : (WC, 3*WC)    bf16 conv1 per-kernel-row block-Toeplitz weights;
    #                             column block k = kernel row k (W shifts baked in).
    # w2_ref : (WC, 3*WC)    bf16 conv2 weights, same layout.
    # bn_ref : (4, WC)       f32  rows: [scale1, bias1, scale2, bias2], tiled over W.
    # o_ref  : (NB, H, WC)   f32  lane-dense output slab.
    Hp = H + 2
    M = NB * Hp

    xf = xp_ref[...].reshape(M, WC)                       # f32 (also the residual)
    xb = xf.astype(jnp.bfloat16)

    bn = bn_ref[...]
    sc1, bi1, sc2, bi2 = bn[0:1], bn[1:2], bn[2:3], bn[3:4]   # (1, WC) each, f32

    def shift_down(y):   # result[r] = y[r-1], zero shifted in at the top
        return jnp.concatenate([jnp.zeros_like(y[:1]), y[:-1]], axis=0)

    def shift_up(y):     # result[r] = y[r+1], zero shifted in at the bottom
        return jnp.concatenate([y[1:], jnp.zeros_like(y[:1])], axis=0)

    # ---- conv1: one MXU matmul over all 3 kernel rows (K=WC, N=3*WC), f32 accum.
    # The three 128-lane column blocks are vreg-aligned -> free slices.
    y = jnp.dot(xb, w1_ref[...], preferred_element_type=jnp.float32)      # (M, 3*WC)
    s1 = shift_down(y[:, :WC]) + y[:, WC:2 * WC] + shift_up(y[:, 2 * WC:])

    # Zero the per-image H-padding rows so conv2 sees exact zero padding.
    hp = lax.broadcasted_iota(jnp.int32, (NB, Hp, WC), 1).reshape(M, WC)
    row_mask = ((hp != 0) & (hp != Hp - 1)).astype(jnp.float32)

    out1 = jnp.maximum(s1 * sc1 + bi1, 0.0) * row_mask                    # BN1 + ReLU (f32)
    o1b = out1.astype(jnp.bfloat16)

    # ---- conv2: same per-kernel-row scheme.
    z = jnp.dot(o1b, w2_ref[...], preferred_element_type=jnp.float32)     # (M, 3*WC)
    s2 = shift_down(z[:, :WC]) + z[:, WC:2 * WC] + shift_up(z[:, 2 * WC:])

    # BN2 + identity residual (reuse the input slab) + final ReLU, all f32.
    out2 = jnp.maximum(s2 * sc2 + bi2 + xf, 0.0)
    o_ref[...] = out2.reshape(NB, Hp, WC)[:, 1:H + 1, :].astype(o_ref.dtype)


def _row_toeplitz(w_oihw, W):
    """OIHW 3x3 weights -> (W*Cin, 3*W*Cout) per-kernel-row block-Toeplitz matrix.

    Column block k (lanes [k*W*Cout, (k+1)*W*Cout)) is the operator of kernel row
    k acting on ONE unpadded image row:
      mat_k[w_in*Cin + ci, w_out*Cout + co] = w[co, ci, k, w_in - w_out + 1]
    for |w_in - w_out| <= 1, else 0 (W-boundary clipping baked into the zeros).
    """
    Cout, Cin, KH, KW = w_oihw.shape
    assert KH == 3 and KW == 3
    wk = jnp.transpose(w_oihw, (2, 3, 1, 0)).astype(jnp.float32)   # (kh, kw, Cin, Cout)
    # shifts[kw][w_in, w_out] = 1  iff  w_in == w_out + kw - 1
    shifts = jnp.stack([jnp.eye(W, W, k=1 - kw, dtype=jnp.float32) for kw in range(3)])
    mats = [jnp.einsum('kab,kio->aibo', shifts, wk[kh]).reshape(W * Cin, W * Cout)
            for kh in range(3)]
    return jnp.concatenate(mats, axis=1)                           # (W*Cin, 3*W*Cout)


def basic_block_pallas(x_nchw, w1_oihw, bn1, w2_oihw, bn2, eps=1e-5):
    """BasicBlock forward (stride=1, downsample=None, eval-mode BN), NCHW f32 in/out."""
    g1, be1, m1, v1 = bn1
    g2, be2, m2, v2 = bn2
    s1 = g1 / jnp.sqrt(v1 + eps)
    b1 = be1 - m1 * s1
    s2 = g2 / jnp.sqrt(v2 + eps)
    b2 = be2 - m2 * s2

    N, Cin, H, W = x_nchw.shape
    Cout = w1_oihw.shape[0]
    assert Cin == Cout, "identity residual requires Cin == Cout (downsample=None)"
    WC = W * Cout
    Hp = H + 2
    # Guard: both Toeplitz weights must stay comfortably VMEM-resident (v7x: 64 MiB).
    assert 2 * WC * (3 * WC) * 2 < 8 * 1024 * 1024, "tile the weight BlockSpecs for this shape"

    # Single H-padded, lane-packed f32 slab (also reused as the residual in-kernel).
    x_nhwc = jnp.transpose(x_nchw, (0, 2, 3, 1)).astype(jnp.float32)        # (N,H,W,C)
    xp = jnp.pad(x_nhwc, ((0, 0), (1, 1), (0, 0), (0, 0)))                  # (N,H+2,W,C)
    xp_rows = xp.reshape(N, Hp, WC)

    w1_cat = _row_toeplitz(w1_oihw, W).astype(jnp.bfloat16)                 # (WC, 3*WC)
    w2_cat = _row_toeplitz(w2_oihw, W).astype(jnp.bfloat16)
    bn_rows = jnp.stack([jnp.tile(s1.astype(jnp.float32), W),
                         jnp.tile(b1.astype(jnp.float32), W),
                         jnp.tile(s2.astype(jnp.float32), W),
                         jnp.tile(b2.astype(jnp.float32), W)], axis=0)      # (4, WC)

    # grid=(min(N,2),) "parallel": v7x's two TensorCores split the batch; the rest
    # of the batch is folded into the matmul M dimension (NB images per step), so
    # v5e/v6e pay at most 2 steps of fixed per-step overhead.
    G = 2 if (N >= 2 and N % 2 == 0) else 1
    NB = N // G

    kernel = functools.partial(basic_block_kernel, H=H, NB=NB, WC=WC)

    out = pl.pallas_call(
        kernel,
        out_shape=jax.ShapeDtypeStruct((N, H, WC), jnp.float32),
        grid_spec=pltpu.PrefetchScalarGridSpec(
            num_scalar_prefetch=0,
            grid=(G,),
            in_specs=[
                pl.BlockSpec((NB, Hp, WC), lambda g: (g, 0, 0)),
                pl.BlockSpec((WC, 3 * WC), lambda g: (0, 0)),
                pl.BlockSpec((WC, 3 * WC), lambda g: (0, 0)),
                pl.BlockSpec((4, WC), lambda g: (0, 0)),
            ],
            out_specs=pl.BlockSpec((NB, H, WC), lambda g: (g, 0, 0)),
        ),
        compiler_params=pltpu.CompilerParams(
            dimension_semantics=("parallel",)),
    )(xp_rows, w1_cat, w2_cat, bn_rows)

    out = out.reshape(N, H, W, Cout)
    return jnp.transpose(out, (0, 3, 1, 2))          # back to NCHW (module interface)


def basic_block_ref(x_nchw, w1, bn1, w2, bn2, eps=1e-5):
    """Pure-JAX f32 reference (eval-mode BN), NCHW, matches PyTorch BasicBlock."""
    def bn(x, p):
        g, b, m, v = (t.reshape(1, -1, 1, 1) for t in p)
        return (x - m) / jnp.sqrt(v + eps) * g + b

    def conv(x, w):
        return lax.conv_general_dilated(
            x, w, window_strides=(1, 1), padding=((1, 1), (1, 1)),
            dimension_numbers=("NCHW", "OIHW", "NCHW"))

    out = jnp.maximum(bn(conv(x_nchw, w1), bn1), 0.0)
    out = bn(conv(out, w2), bn2)
    return jnp.maximum(out + x_nchw, 0.0)


if __name__ == "__main__":
    # BasicBlock(inplanes=8, planes=8, stride=1, downsample=None); W*C = 128 lanes.
    N, C, H, W = 2, 8, 16, 16
    key = jax.random.PRNGKey(0)
    ks = jax.random.split(key, 12)

    x = jax.random.normal(ks[0], (N, C, H, W), jnp.float32)

    w1 = jax.random.normal(ks[1], (C, C, 3, 3), jnp.float32) * 0.1   # OIHW
    w2 = jax.random.normal(ks[2], (C, C, 3, 3), jnp.float32) * 0.1

    bn1 = (1.0 + 0.1 * jax.random.normal(ks[3], (C,), jnp.float32),   # gamma
           0.1 * jax.random.normal(ks[4], (C,), jnp.float32),         # beta
           0.1 * jax.random.normal(ks[5], (C,), jnp.float32),         # running_mean
           0.5 + jax.random.uniform(ks[6], (C,), jnp.float32))        # running_var
    bn2 = (1.0 + 0.1 * jax.random.normal(ks[7], (C,), jnp.float32),
           0.1 * jax.random.normal(ks[8], (C,), jnp.float32),
           0.1 * jax.random.normal(ks[9], (C,), jnp.float32),
           0.5 + jax.random.uniform(ks[10], (C,), jnp.float32))

    y = basic_block_pallas(x, w1, bn1, w2, bn2)
    y = jax.block_until_ready(y)

    y_ref = basic_block_ref(x, w1, bn1, w2, bn2)
    assert y.shape == (N, C, H, W)
    max_err = float(jnp.max(jnp.abs(y - y_ref)))
    # Tolerance accounts for bf16 matmul operands (f32 accumulation) vs f32 reference.
    assert jnp.allclose(y, y_ref, rtol=5e-2, atol=5e-2), max_err

    print("KERNEL_OK")
</pallas_src>

<mosaic_0001>
module attributes {stable_mosaic.version = 11 : i64} {
  func.func @basic_block_kernel(%arg0: i32, %arg1: memref<1x18x128xf32, #tpu.memory_space<vmem>>, %arg2: memref<128x384xbf16, #tpu.memory_space<vmem>>, %arg3: memref<128x384xbf16, #tpu.memory_space<vmem>>, %arg4: memref<4x128xf32, #tpu.memory_space<vmem>>, %arg5: memref<1x16x128xf32, #tpu.memory_space<vmem>>) attributes {dimension_semantics = [#tpu.dimension_semantics<parallel>], iteration_bounds = array<i64: 2>, scalar_prefetch = 0 : i64, scratch_operands = 0 : i64, tpu.core_type = #tpu.core_type<tc>, window_params = [{transform_indices = @transform_0, window_bounds = array<i64: 1, 18, 128>}, {pipeline_mode = #tpu.pipeline_mode<synchronous>, transform_indices = @transform_1, window_bounds = array<i64: 128, 384>}, {pipeline_mode = #tpu.pipeline_mode<synchronous>, transform_indices = @transform_2, window_bounds = array<i64: 128, 384>}, {pipeline_mode = #tpu.pipeline_mode<synchronous>, transform_indices = @transform_3, window_bounds = array<i64: 4, 128>}, {transform_indices = @transform_4, window_bounds = array<i64: 1, 16, 128>}]} {
    %c0 = arith.constant 0 : index
    %c0_0 = arith.constant 0 : index
    %c0_1 = arith.constant 0 : index
    %0 = vector.load %arg1[%c0, %c0_0, %c0_1] : memref<1x18x128xf32, #tpu.memory_space<vmem>>, vector<1x18x128xf32>
    %1 = vector.shape_cast %0 : vector<1x18x128xf32> to vector<18x128xf32>
    %2 = arith.truncf %1 : vector<18x128xf32> to vector<18x128xbf16>
    %c0_2 = arith.constant 0 : index
    %c0_3 = arith.constant 0 : index
    %3 = vector.load %arg4[%c0_2, %c0_3] : memref<4x128xf32, #tpu.memory_space<vmem>>, vector<4x128xf32>
    %4 = vector.extract_strided_slice %3 {offsets = [0, 0], sizes = [1, 128], strides = [1, 1]} : vector<4x128xf32> to vector<1x128xf32>
    %5 = vector.extract_strided_slice %3 {offsets = [1, 0], sizes = [1, 128], strides = [1, 1]} : vector<4x128xf32> to vector<1x128xf32>
    %6 = vector.extract_strided_slice %3 {offsets = [2, 0], sizes = [1, 128], strides = [1, 1]} : vector<4x128xf32> to vector<1x128xf32>
    %7 = vector.extract_strided_slice %3 {offsets = [3, 0], sizes = [1, 128], strides = [1, 1]} : vector<4x128xf32> to vector<1x128xf32>
    %c0_4 = arith.constant 0 : index
    %c0_5 = arith.constant 0 : index
    %8 = vector.load %arg2[%c0_4, %c0_5] : memref<128x384xbf16, #tpu.memory_space<vmem>>, vector<128x384xbf16>
    %cst = arith.constant dense<0.000000e+00> : vector<18x384xf32>
    %9 = tpu.matmul %2, %8, %cst {dimension_numbers = #tpu.dot_dimension_numbers<[1], [0], [0], [1], [0, 0, 1, 1], [], []>} : vector<18x128xbf16>, vector<128x384xbf16>, vector<18x384xf32> -> vector<18x384xf32>
    %10 = vector.extract_strided_slice %9 {offsets = [0, 0], sizes = [18, 128], strides = [1, 1]} : vector<18x384xf32> to vector<18x128xf32>
    %cst_6 = arith.constant 0.000000e+00 : f32
    %11 = vector.broadcast %cst_6 : f32 to vector<1x128xf32>
    %12 = vector.extract_strided_slice %10 {offsets = [0, 0], sizes = [17, 128], strides = [1, 1]} : vector<18x128xf32> to vector<17x128xf32>
    %13 = tpu.concatenate %11, %12 in 0 : vector<1x128xf32>, vector<17x128xf32> -> vector<18x128xf32>
    %14 = vector.extract_strided_slice %9 {offsets = [0, 128], sizes = [18, 128], strides = [1, 1]} : vector<18x384xf32> to vector<18x128xf32>
    %15 = arith.addf %13, %14 : vector<18x128xf32>
    %16 = vector.extract_strided_slice %9 {offsets = [0, 256], sizes = [18, 128], strides = [1, 1]} : vector<18x384xf32> to vector<18x128xf32>
    %17 = vector.extract_strided_slice %16 {offsets = [1, 0], sizes = [17, 128], strides = [1, 1]} : vector<18x128xf32> to vector<17x128xf32>
    %cst_7 = arith.constant 0.000000e+00 : f32
    %18 = vector.broadcast %cst_7 : f32 to vector<1x128xf32>
    %19 = tpu.concatenate %17, %18 in 0 : vector<17x128xf32>, vector<1x128xf32> -> vector<18x128xf32>
    %20 = arith.addf %15, %19 : vector<18x128xf32>
    %21 = tpu.iota {dimensions = array<i32: 1>} : vector<1x18x128xi32>
    %22 = vector.shape_cast %21 : vector<1x18x128xi32> to vector<18x128xi32>
    %c0_i32 = arith.constant 0 : i32
    %23 = vector.broadcast %c0_i32 : i32 to vector<18x128xi32>
    %24 = arith.cmpi ne, %22, %23 : vector<18x128xi32>
    %c17_i32 = arith.constant 17 : i32
    %25 = vector.broadcast %c17_i32 : i32 to vector<18x128xi32>
    %26 = arith.cmpi ne, %22, %25 : vector<18x128xi32>
    %27 = arith.andi %24, %26 : vector<18x128xi1>
    %28 = arith.extui %27 : vector<18x128xi1> to vector<18x128xi32>
    %29 = arith.sitofp %28 : vector<18x128xi32> to vector<18x128xf32>
    %30 = vector.broadcast %4 : vector<1x128xf32> to vector<18x128xf32>
    %31 = arith.mulf %20, %30 : vector<18x128xf32>
    %32 = vector.broadcast %5 : vector<1x128xf32> to vector<18x128xf32>
    %33 = arith.addf %31, %32 : vector<18x128xf32>
    %cst_8 = arith.constant 0.000000e+00 : f32
    %34 = vector.broadcast %cst_8 : f32 to vector<18x128xf32>
    %35 = arith.maximumf %33, %34 : vector<18x128xf32>
    %36 = arith.mulf %35, %29 : vector<18x128xf32>
    %37 = arith.truncf %36 : vector<18x128xf32> to vector<18x128xbf16>
    %c0_9 = arith.constant 0 : index
    %c0_10 = arith.constant 0 : index
    %38 = vector.load %arg3[%c0_9, %c0_10] : memref<128x384xbf16, #tpu.memory_space<vmem>>, vector<128x384xbf16>
    %cst_11 = arith.constant dense<0.000000e+00> : vector<18x384xf32>
    %39 = tpu.matmul %37, %38, %cst_11 {dimension_numbers = #tpu.dot_dimension_numbers<[1], [0], [0], [1], [0, 0, 1, 1], [], []>} : vector<18x128xbf16>, vector<128x384xbf16>, vector<18x384xf32> -> vector<18x384xf32>
    %40 = vector.extract_strided_slice %39 {offsets = [0, 0], sizes = [18, 128], strides = [1, 1]} : vector<18x384xf32> to vector<18x128xf32>
    %cst_12 = arith.constant 0.000000e+00 : f32
    %41 = vector.broadcast %cst_12 : f32 to vector<1x128xf32>
    %42 = vector.extract_strided_slice %40 {offsets = [0, 0], sizes = [17, 128], strides = [1, 1]} : vector<18x128xf32> to vector<17x128xf32>
    %43 = tpu.concatenate %41, %42 in 0 : vector<1x128xf32>, vector<17x128xf32> -> vector<18x128xf32>
    %44 = vector.extract_strided_slice %39 {offsets = [0, 128], sizes = [18, 128], strides = [1, 1]} : vector<18x384xf32> to vector<18x128xf32>
    %45 = arith.addf %43, %44 : vector<18x128xf32>
    %46 = vector.extract_strided_slice %39 {offsets = [0, 256], sizes = [18, 128], strides = [1, 1]} : vector<18x384xf32> to vector<18x128xf32>
    %47 = vector.extract_strided_slice %46 {offsets = [1, 0], sizes = [17, 128], strides = [1, 1]} : vector<18x128xf32> to vector<17x128xf32>
    %cst_13 = arith.constant 0.000000e+00 : f32
    %48 = vector.broadcast %cst_13 : f32 to vector<1x128xf32>
    %49 = tpu.concatenate %47, %48 in 0 : vector<17x128xf32>, vector<1x128xf32> -> vector<18x128xf32>
    %50 = arith.addf %45, %49 : vector<18x128xf32>
    %51 = vector.broadcast %6 : vector<1x128xf32> to vector<18x128xf32>
    %52 = arith.mulf %50, %51 : vector<18x128xf32>
    %53 = vector.broadcast %7 : vector<1x128xf32> to vector<18x128xf32>
    %54 = arith.addf %52, %53 : vector<18x128xf32>
    %55 = arith.addf %54, %1 : vector<18x128xf32>
    %cst_14 = arith.constant 0.000000e+00 : f32
    %56 = vector.broadcast %cst_14 : f32 to vector<18x128xf32>
    %57 = arith.maximumf %55, %56 : vector<18x128xf32>
    %58 = vector.shape_cast %57 : vector<18x128xf32> to vector<1x18x128xf32>
    %59 = vector.extract_strided_slice %58 {offsets = [0, 1, 0], sizes = [1, 16, 128], strides = [1, 1, 1]} : vector<1x18x128xf32> to vector<1x16x128xf32>
    %c0_15 = arith.constant 0 : index
    %c0_16 = arith.constant 0 : index
    %c0_17 = arith.constant 0 : index
    %60 = vector.load %arg5[%c0_15, %c0_16, %c0_17] : memref<1x16x128xf32, #tpu.memory_space<vmem>>, vector<1x16x128xf32>
    tpu.vector_store %arg5[%c0_15, %c0_16, %c0_17], %59 {strides = array<i32>} : memref<1x16x128xf32, #tpu.memory_space<vmem>>, vector<1x16x128xf32>,
    return
  }
  func.func @transform_0(%arg0: i32) -> (i32, i32, i32) {
    %c0_i32 = arith.constant 0 : i32
    %c0_i32_0 = arith.constant 0 : i32
    %c0_i32_1 = arith.constant 0 : i32
    return %arg0, %c0_i32, %c0_i32_0 : i32, i32, i32
  }
  func.func @transform_1(%arg0: i32) -> (i32, i32) {
    %c0_i32 = arith.constant 0 : i32
    %c0_i32_0 = arith.constant 0 : i32
    %c0_i32_1 = arith.constant 0 : i32
    return %c0_i32, %c0_i32_0 : i32, i32
  }
  func.func @transform_2(%arg0: i32) -> (i32, i32) {
    %c0_i32 = arith.constant 0 : i32
    %c0_i32_0 = arith.constant 0 : i32
    %c0_i32_1 = arith.constant 0 : i32
    return %c0_i32, %c0_i32_0 : i32, i32
  }
  func.func @transform_3(%arg0: i32) -> (i32, i32) {
    %c0_i32 = arith.constant 0 : i32
    %c0_i32_0 = arith.constant 0 : i32
    %c0_i32_1 = arith.constant 0 : i32
    return %c0_i32, %c0_i32_0 : i32, i32
  }
  func.func @transform_4(%arg0: i32) -> (i32, i32, i32) {
    %c0_i32 = arith.constant 0 : i32
    %c0_i32_0 = arith.constant 0 : i32
    %c0_i32_1 = arith.constant 0 : i32
    return %arg0, %c0_i32, %c0_i32_0 : i32, i32, i32
  }
}

</mosaic_0001>

<bundles_post_ra>
// kernel: tpu_custom_call.1
= control target key start
LH: loop header
LB: loop body
LE: loop exit
PB: predicated region body
PF: predicated region fallthrough
CT: control target
= control target key end

     0   :  { %9 = vsyncpa [#allocation3], 0  ;;  %s1567_s0 = inlined_call_operand.vmem [shape: f32[2,18,128], index: 0, kind: input, shape index: {}]   ;;  %s1568_s1 = inlined_call_operand.hbm [shape: bf16[128,384], index: 1, kind: input, shape index: {}]   ;;  %s1569_s2 = inlined_call_operand.hbm [shape: bf16[128,384], index: 2, kind: input, shape index: {}]   ;;  %s1570_s3 = inlined_call_operand.vmem [shape: f32[4,128], index: 3, kind: input, shape index: {}]   ;;  %s1571_s4 = inlined_call_operand.hbm [shape: f32[2,16,128], index: 4, kind: output, shape index: {}]  }
   0x1   :  { %10 = vsyncpa [#allocation6], 0 }
   0x2   :  { %11 = vsyncpa [#allocation4], 0 }
   0x3   :  { %13 = vsyncpa [#allocation4 + $0x1], 0  ;;  %s1382_s15 = smov 0   ;;  %s1384_s16 = smov 0  }
   0x4   :  { %s1386_s17 = smov 0   ;;  %s1388_s18 = smov 0  }
   0x5 LB: > { %s1403_s19 = sadd.s32 4294967295, %s1348_s18   ;;  %s878_s20 = sadd.s32 4294967294, %s1348_s18   ;;  %s1348_s18 = sphi %s1388_s18, %s1578_s18   ;;  %s1344_s17 = sphi %s1386_s17, %s1577_s17   ;;  %s1340_s16 = sphi %s1384_s16, %s1576_s16   ;;  %s1336_s15 = sphi %s1382_s15, %s1575_s15  }
   0x6   : > { %s1407_s21 = sadd.s32 1, %s1348_s18   ;;  %s115_s22 = sadd.s32 1, %s1344_s17 }
   0x7   : > { %s112_s23 = ssub.s32 %s1348_s18, %s1407_s21  ;;  %p125_p0 = scmp.ne.s32.totalorder %s1344_s17, %s1340_s16 }
   0x8   : > { %p113_p1 = scmp.eq.s32.totalorder %s112_s23, 0  ;;  %p126_p2 = scmp.eq.s32.totalorder %s1403_s19, 1 }
   0x9   : > { %p131_p3 = scmp.ne.s32.totalorder %s1340_s16, %s1336_s15  ;;  %p132_p4 = scmp.eq.s32.totalorder %s878_s20, 1 }
   0xa   : > { %s1418_s24 = scalar_select %p113_p1, %s1344_s17, %s115_s22  }
   0xb   : > { %p1420_p5 = por %p126_p2, %p125_p0  ;;  %p1424_p6 = por %p132_p4, %p131_p3 }
   0xc   : > { %p879_p7 = scmp.ge.s32.totalorder %s1348_s18, 1  ;;  %p139_p8 = scmp.lt.s32.totalorder %s1348_s18, 3 }
   0xd   : > { %p1174_p9 = scmp.eq.s32.totalorder %s1403_s19, 0  ;;  %s150_s30 = sshll.u32 %s1568_s1, 4  ;;  %s151_s30 = int_to_ptr.hbm [resolvable:$true] %s150_s30 }
   0xe   : > { %p1431_p10 = pnand %p879_p7, %p139_p8  ;;  %s1350_s5 = smov [#allocation2]  }
   0xf   : > { %s152_s6 = sshll.u32 %s1350_s5, 4  ;;  %s164_s9 = sshll.u32 %s1569_s2, 4  ;;  %s153_s6 = int_to_ptr.vmem [resolvable:$true] %s152_s6  ;;  %s165_s9 = int_to_ptr.hbm [resolvable:$true] %s164_s9 }
  0x10   : > { %p1163_p11 = pneg %p1431_p10  ;;  %s1351_s10 = smov 192  }
  0x11   : > { %s1352_s11 = smov 12   ;;  %s1353_s12 = smov [#allocation5]  }
  0x12   : > { %p1164_p12 = pnand %p1174_p9, %p1163_p11  ;;  %s166_s13 = sshll.u32 %s1353_s12, 4  ;;  %s167_s13 = int_to_ptr.vmem [resolvable:$true] %s166_s13 }
  0x13   : > { %193 = sbr.rel (%p1431_p10) target bundleno = 405 (0x195), region = 36 }
  0x14   : > { %1166 = dma.hbm_to_vmem [thread:$0]  (!%p1164_p12), %s151_s30, 3072, %s153_s6, [#allocation3], %s1351_s10, %s1351_s10, %s1352_s11  }
  0x15   : > { %1169 = dma.hbm_to_vmem [thread:$0]  (!%p1164_p12), %s165_s9, 3072, %s167_s13, [#allocation6], %s1351_s10, %s1351_s10, %s1352_s11  }
  0x18   : > { %1323 = dma.done.wait (%p1174_p9), [#allocation3], 3072  }
  0x19   : > { %1325 = vsyncadd (%p1174_p9), [#allocation3], 4294964224 }
  0x1a   : > { %1327 = dma.done.wait (%p1174_p9), [#allocation6], 3072  }
  0x1b   : > { %1329 = vsyncadd (%p1174_p9), [#allocation6], 4294964224  ;;  %v974_v0 = vld [vmem:[#allocation2 + $0xa8] sm:$0xf]  ;;  %v1109_v1 = vld [vmem:[#allocation2 + $0xb0] sm:$0xf0] }
  0x1c   : > { %v982_v2 = vld [vmem:[#allocation2 + $0xb0] sm:$0xf]  ;;  %v975_v3 = vor.u32 %v1109_v1, %v974_v0  ;;  %v1110_v4 = vld [vmem:[#allocation2 + $0xb8] sm:$0xf0]  ;;  %v1108_v5 = vld [vmem:[#allocation2 + $0xac] sm:$0xf] }
  0x1d   : > { %v976_v6 = vld [vmem:[#allocation2 + $0xb4] sm:$0xf0]  ;;  %v983_v7 = vor.u32 %v1110_v4, %v982_v2  ;;  %v962_v9 = vld [vmem:[#allocation2 + $0x90] sm:$0xf]  ;;  %v1106_v10 = vld [vmem:[#allocation2 + $0x98] sm:$0xf0] }
  0x1e   : > { %v979_v8 = vor.u32 %v1108_v5, %v976_v6  ;;  %v970_v11 = vld [vmem:[#allocation2 + $0x98] sm:$0xf]  ;;  %396 = vmatpush.bf16.msra.mxu0 %v975_v3  ;;  %v963_v12 = vor.u32 %v1106_v10, %v962_v9  ;;  %v1107_v13 = vld [vmem:[#allocation2 + $0xa0] sm:$0xf0]  ;;  %v1105_v14 = vld [vmem:[#allocation2 + $0x94] sm:$0xf] }
  0x1f   : > { %v964_v15 = vld [vmem:[#allocation2 + $0x9c] sm:$0xf0]  ;;  %432 = vmatpush.bf16.msra.mxu2 %v983_v7  ;;  %v971_v16 = vor.u32 %v1107_v13, %v970_v11  ;;  %v950_v18 = vld [vmem:[#allocation2 + $0x78] sm:$0xf]  ;;  %v1103_v19 = vld [vmem:[#allocation2 + $0x80] sm:$0xf0] }
  0x20   : > { %414 = vmatpush.bf16.msra.mxu1 %v979_v8  ;;  %v967_v17 = vor.u32 %v1105_v14, %v964_v15  ;;  %v958_v20 = vld [vmem:[#allocation2 + $0x80] sm:$0xf]  ;;  %v1104_v21 = vld [vmem:[#allocation2 + $0x88] sm:$0xf0]  ;;  %v1102_v22 = vld [vmem:[#allocation2 + $0x7c] sm:$0xf]  ;;  %v951_v24 = vor.u32 %v1103_v19, %v950_v18 }
  0x21   : > { %v952_v23 = vld [vmem:[#allocation2 + $0x84] sm:$0xf0]  ;;  %v959_v25 = vor.u32 %v1104_v21, %v958_v20  ;;  %v938_v27 = vld [vmem:[#allocation2 + $0x60] sm:$0xf]  ;;  %v1100_v28 = vld [vmem:[#allocation2 + $0x68] sm:$0xf0] }
  0x22   : > { %397 = vmatpush.bf16.msra.mxu0 %v963_v12  ;;  %v955_v26 = vor.u32 %v1102_v22, %v952_v23  ;;  %v946_v29 = vld [vmem:[#allocation2 + $0x68] sm:$0xf]  ;;  %v1101_v30 = vld [vmem:[#allocation2 + $0x70] sm:$0xf0]  ;;  %v1099_v31 = vld [vmem:[#allocation2 + $0x64] sm:$0xf]  ;;  %v939_v33 = vor.u32 %v1100_v28, %v938_v27 }
  0x23   : > { %433 = vmatpush.bf16.msra.mxu2 %v971_v16  ;;  %v940_v32 = vld [vmem:[#allocation2 + $0x6c] sm:$0xf0]  ;;  %p225_p13 = scmp.lt.s32.totalorder %s1403_s19, 1  ;;  %v947_v34 = vor.u32 %v1101_v30, %v946_v29  ;;  %v926_v36 = vld [vmem:[#allocation2 + $0x48] sm:$0xf]  ;;  %vm453_vm0 = vcmask 1040384  }
  0x24   : > { %415 = vmatpush.bf16.msra.mxu1 %v967_v17  ;;  %v943_v35 = vor.u32 %v1099_v31, %v940_v32  ;;  %v1097_v37 = vld [vmem:[#allocation2 + $0x50] sm:$0xf0]  ;;  %v934_v38 = vld [vmem:[#allocation2 + $0x50] sm:$0xf]  ;;  %v1098_v39 = vld [vmem:[#allocation2 + $0x58] sm:$0xf0] }
  0x25   : > { %v1096_v40 = vld [vmem:[#allocation2 + $0x4c] sm:$0xf]  ;;  %v928_v41 = vld [vmem:[#allocation2 + $0x54] sm:$0xf0]  ;;  %v927_v42 = vor.u32 %v1097_v37, %v926_v36  ;;  %s1457_s14 = scalar_select %p225_p13, %s1403_s19, 1  ;;  %v935_v43 = vor.u32 %v1098_v39, %v934_v38  ;;  %vm469_vm1 = vcmask 1046528  }
  0x26   : > { %398 = vmatpush.bf16.msra.mxu0 %v951_v24  ;;  %v931_v44 = vor.u32 %v1096_v40, %v928_v41  ;;  %v914_v45 = vld [vmem:[#allocation2 + $0x30] sm:$0xf]  ;;  %v1094_v46 = vld [vmem:[#allocation2 + $0x38] sm:$0xf0]  ;;  %v922_v47 = vld [vmem:[#allocation2 + $0x38] sm:$0xf] }
  0x27   : > { %434 = vmatpush.bf16.msra.mxu2 %v959_v25  ;;  %v1095_v48 = vld [vmem:[#allocation2 + $0x40] sm:$0xf0]  ;;  %v1093_v49 = vld [vmem:[#allocation2 + $0x34] sm:$0xf]  ;;  %v916_v50 = vld [vmem:[#allocation2 + $0x3c] sm:$0xf0]  ;;  %v915_v51 = vor.u32 %v1094_v46, %v914_v45 }
  0x28   : > { %416 = vmatpush.bf16.msra.mxu1 %v955_v26  ;;  %s1152_s20 = smul.u32 24, %s1457_s14  ;;  %v923_v52 = vor.u32 %v1095_v48, %v922_v47  ;;  %v919_v53 = vor.u32 %v1093_v49, %v916_v50  ;;  %v902_v54 = vld [vmem:[#allocation2 + $0x18] sm:$0xf]  ;;  %v1091_v55 = vld [vmem:[#allocation2 + $0x20] sm:$0xf0]  ;;  %s222_s30 = sand.u32 1, %s1340_s16  }
  0x29   : > { %v910_v56 = vld [vmem:[#allocation2 + $0x20] sm:$0xf]  ;;  %v1092_v57 = vld [vmem:[#allocation2 + $0x28] sm:$0xf0]  ;;  %v1090_v58 = vld [vmem:[#allocation2 + $0x1c] sm:$0xf]  ;;  %v903_v60 = vor.u32 %v1091_v55, %v902_v54 }
  0x2a   : > { %399 = vmatpush.bf16.msra.mxu0 %v939_v33  ;;  %v904_v59 = vld [vmem:[#allocation2 + $0x24] sm:$0xf0]  ;;  %v911_v61 = vor.u32 %v1092_v57, %v910_v56  ;;  %v890_v63 = vld [vmem:[#allocation2] sm:$0xf]  ;;  %v1088_v0 = vld [vmem:[#allocation2 + $0x8] sm:$0xf0]  ;;  %s229_s27 = scalar_lea.vmem %s1567_s0, %s1152_s20 }
  0x2b   : > { %435 = vmatpush.bf16.msra.mxu2 %v947_v34  ;;  %v907_v62 = vor.u32 %v1090_v58, %v904_v59  ;;  %v898_v1 = vld [vmem:[#allocation2 + $0x8] sm:$0xf]  ;;  %v1089_v2 = vld [vmem:[#allocation2 + $0x10] sm:$0xf0]  ;;  %v1087_v3 = vld [vmem:[#allocation2 + $0x4] sm:$0xf]  ;;  %v891_v5 = vor.u32 %v1088_v0, %v890_v63 }
  0x2c   : > { %417 = vmatpush.bf16.msra.mxu1 %v943_v35  ;;  %v892_v4 = vld [vmem:[#allocation2 + $0xc] sm:$0xf0]  ;;  %v1463_v6 = vld [vmem:[%s229_s27] sm:$0xff]  ;;  %v1465_v7 = vld [vmem:[%s229_s27 + $0x8] sm:$0xff]  ;;  %v899_v8 = vor.u32 %v1089_v2, %v898_v1  ;;  %s886_s5 = sshll.u32 %s222_s30, 4  ;;  %s1135_s7 = sshll.u32 %s1403_s19, 4 }
  0x2d   : > { %v895_v9 = vor.u32 %v1087_v3, %v892_v4  ;;  %v233_v10 = vpack.c.bf16 %v1465_v7, %v1463_v6  ;;  %v1469_v11 = vld [vmem:[%s229_s27 + $0x10] sm:$0x3]  ;;  %v1072_v13 = vld [vmem:[#allocation5 + $0xa8] sm:$0xf]  ;;  %v1133_v14 = vld [vmem:[#allocation5 + $0xb0] sm:$0xf0]  ;;  %s790_s10 = scalar_lea.hbm %s1571_s4, %s1135_s7 }
  0x2e   : > { %400 = vmatpush.bf16.msra.mxu0 %v927_v42  ;;  %v234_v12 = vpack.c.bf16 %v1469_v11, %v1469_v11  ;;  %v1132_v15 = vld [vmem:[#allocation5 + $0xac] sm:$0xf]  ;;  %v1073_v16 = vor.u32 %v1133_v14, %v1072_v13  ;;  %v1074_v17 = vld [vmem:[#allocation5 + $0xb4] sm:$0xf0]  ;;  %v1080_v18 = vld [vmem:[#allocation5 + $0xb0] sm:$0xf] }
  0x2f   : > { %436 = vmatpush.bf16.msra.mxu2 %v935_v43  ;;  %v1134_v19 = vld [vmem:[#allocation5 + $0xb8] sm:$0xf0]  ;;  %v1077_v20 = vor.u32 %v1132_v15, %v1074_v17  ;;  %v1060_v22 = vld [vmem:[#allocation5 + $0x90] sm:$0xf]  ;;  %v1129_v24 = vld [vmem:[#allocation5 + $0x94] sm:$0xf] }
  0x30   : > { %418 = vmatpush.bf16.msra.mxu1 %v931_v44  ;;  %v1473_v21 = vor.u32 %v1134_v19, %v1080_v18  ;;  %677 = vmatpush.bf16.msra.mxu3 %v1073_v16  ;;  %v1130_v23 = vld [vmem:[#allocation5 + $0x98] sm:$0xf0]  ;;  %v1062_v26 = vld [vmem:[#allocation5 + $0x9c] sm:$0xf0]  ;;  %v1068_v27 = vld [vmem:[#allocation5 + $0x98] sm:$0xf] }
  0x31   : > { %v1061_v25 = vor.u32 %v1130_v23, %v1060_v22  ;;  %v1131_v28 = vld [vmem:[#allocation5 + $0xa0] sm:$0xf0]  ;;  %v1065_v29 = vor.u32 %v1129_v24, %v1062_v26  ;;  %v1048_v31 = vld [vmem:[#allocation5 + $0x78] sm:$0xf]  ;;  %v1126_v33 = vld [vmem:[#allocation5 + $0x7c] sm:$0xf] }
  0x32   : > { %401 = vmatpush.bf16.msra.mxu0 %v915_v51  ;;  %v1476_v30 = vor.u32 %v1131_v28, %v1068_v27  ;;  %v1127_v32 = vld [vmem:[#allocation5 + $0x80] sm:$0xf0]  ;;  %v1050_v35 = vld [vmem:[#allocation5 + $0x84] sm:$0xf0]  ;;  %v1056_v36 = vld [vmem:[#allocation5 + $0x80] sm:$0xf] }
  0x33   : > { %437 = vmatpush.bf16.msra.mxu2 %v923_v52  ;;  %v1049_v34 = vor.u32 %v1127_v32, %v1048_v31  ;;  %v1128_v37 = vld [vmem:[#allocation5 + $0x88] sm:$0xf0]  ;;  %v1053_v38 = vor.u32 %v1126_v33, %v1050_v35  ;;  %v1036_v40 = vld [vmem:[#allocation5 + $0x60] sm:$0xf]  ;;  %v1123_v43 = vld [vmem:[#allocation5 + $0x64] sm:$0xf] }
  0x34   : > { %419 = vmatpush.bf16.msra.mxu1 %v919_v53  ;;  %678 = vmatpush.bf16.msra.mxu3 %v1061_v25  ;;  %v1479_v39 = vor.u32 %v1128_v37, %v1056_v36  ;;  %v1124_v41 = vld [vmem:[#allocation5 + $0x68] sm:$0xf0]  ;;  %v1038_v44 = vld [vmem:[#allocation5 + $0x6c] sm:$0xf0]  ;;  %v1044_v45 = vld [vmem:[#allocation5 + $0x68] sm:$0xf] }
  0x35   : > { %v1037_v42 = vor.u32 %v1124_v41, %v1036_v40  ;;  %v1041_v46 = vor.u32 %v1123_v43, %v1038_v44  ;;  %v1125_v47 = vld [vmem:[#allocation5 + $0x70] sm:$0xf0]  ;;  %v1024_v49 = vld [vmem:[#allocation5 + $0x48] sm:$0xf]  ;;  %v1120_v52 = vld [vmem:[#allocation5 + $0x4c] sm:$0xf]  ;;  %v482_v43 = vlaneseq }
  0x36   : > { %402 = vmatpush.bf16.msra.mxu0 %v903_v60  ;;  %v1482_v48 = vor.u32 %v1125_v47, %v1044_v45  ;;  %v1121_v50 = vld [vmem:[#allocation5 + $0x50] sm:$0xf0]  ;;  %v1026_v53 = vld [vmem:[#allocation5 + $0x54] sm:$0xf0]  ;;  %v1032_v54 = vld [vmem:[#allocation5 + $0x50] sm:$0xf] }
  0x37   : > { %438 = vmatpush.bf16.msra.mxu2 %v911_v61  ;;  %v1025_v51 = vor.u32 %v1121_v50, %v1024_v49  ;;  %v1029_v55 = vor.u32 %v1120_v52, %v1026_v53  ;;  %v1122_v56 = vld [vmem:[#allocation5 + $0x58] sm:$0xf0]  ;;  %v1012_v58 = vld [vmem:[#allocation5 + $0x30] sm:$0xf]  ;;  %v1117_v60 = vld [vmem:[#allocation5 + $0x34] sm:$0xf] }
  0x38   : > { %420 = vmatpush.bf16.msra.mxu1 %v907_v62  ;;  %679 = vmatpush.bf16.msra.mxu3 %v1049_v34  ;;  %v1485_v57 = vor.u32 %v1122_v56, %v1032_v54  ;;  %v1118_v59 = vld [vmem:[#allocation5 + $0x38] sm:$0xf0]  ;;  %v1014_v62 = vld [vmem:[#allocation5 + $0x3c] sm:$0xf0]  ;;  %v1020_v63 = vld [vmem:[#allocation5 + $0x38] sm:$0xf] }
  0x39   : > { %v1013_v61 = vor.u32 %v1118_v59, %v1012_v58  ;;  %v1119_v0 = vld [vmem:[#allocation5 + $0x40] sm:$0xf0]  ;;  %v1017_v1 = vor.u32 %v1117_v60, %v1014_v62  ;;  %v1000_v3 = vld [vmem:[#allocation5 + $0x18] sm:$0xf]  ;;  %v988_v15 = vld [vmem:[#allocation5] sm:$0xf] }
  0x3a   : > { %403 = vmatpush.bf16.msra.mxu0 %v891_v5  ;;  %v1488_v2 = vor.u32 %v1119_v0, %v1020_v63  ;;  %v1115_v4 = vld [vmem:[#allocation5 + $0x20] sm:$0xf0]  ;;  %v1114_v5 = vld [vmem:[#allocation5 + $0x1c] sm:$0xf]  ;;  %v1112_v16 = vld [vmem:[#allocation5 + $0x8] sm:$0xf0] }
  0x3b   : > { %439 = vmatpush.bf16.msra.mxu2 %v899_v8  ;;  %v1001_v8 = vor.u32 %v1115_v4, %v1000_v3  ;;  %v1111_v17 = vld [vmem:[#allocation5 + $0x4] sm:$0xf]  ;;  %v989_v19 = vor.u32 %v1112_v16, %v988_v15  ;;  %v996_v22 = vld [vmem:[#allocation5 + $0x8] sm:$0xf]  ;;  %v1113_v23 = vld [vmem:[#allocation5 + $0x10] sm:$0xf0] }
  0x3c   : > { %421 = vmatpush.bf16.msra.mxu1 %v895_v9  ;;  %680 = vmatpush.bf16.msra.mxu3 %v1037_v42  ;;  %v1002_v9 = vld [vmem:[#allocation5 + $0x24] sm:$0xf0]  ;;  %v997_v26 = vor.u32 %v1113_v23, %v996_v22  ;;  %v1501_v33 = vld [vmem:[%s1570_s3] sm:$0xf]  ;;  %v483_v49 = vshrl.u32 %v482_v43, 7  ;;  %v1354_v0 = vmov 0.0  }
  0x3d   : > { %404 = vmatmul.bf16.vlgmr.msra.gmra.mxu0 %v233_v10  ;;  %v1005_v13 = vor.u32 %v1114_v5, %v1002_v9  ;;  %v501_v37 = vperm.slane %v1501_v33, 0  ;;  %v505_v45 = vperm.slane %v1501_v33, 1  ;;  %s1522_s6 = scalar_lea.vmem [#allocation7], %s886_s5  ;;  %s793_s12 = sshll.u32 %s790_s10, 4  ;;  %s794_s12 = int_to_ptr.hbm [resolvable:$true] %s793_s12 }
  0x3e   : > { %440 = vmatmul.bf16.vlgmr.msra.gmra.mxu2 %v233_v10  ;;  %695 = vmatpush.bf16.msrb.mxu0 %v1077_v20  ;;  %v485_v56 = vadd.s32 16, %v483_v49  ;;  %vm486_vm2 = vcmp.ne.s32.totalorder %v483_v49, 0  ;;  %s791_s11 = sshll.u32 %s1522_s6, 4  ;;  %s779_s19 = scalar_lea.sflag [#allocation4], %s222_s30  ;;  %s792_s11 = int_to_ptr.vmem [resolvable:$true] %s791_s11 }
  0x3f   : > { %422 = vmatmul.bf16.vlgmr.msra.gmra.mxu1 %v233_v10  ;;  %1136 = vmatpush.bf16.msrb.mxu2 %v1077_v20  ;;  %v1008_v10 = vld [vmem:[#allocation5 + $0x20] sm:$0xf]  ;;  %v990_v20 = vld [vmem:[#allocation5 + $0xc] sm:$0xf0]  ;;  %s1292_s13 = sshra.s32 %s794_s12, 4  ;;  %s1298_s23 = scalar_lea.hbm %s1571_s4, 32  ;;  %s1293_s13 = int_to_ptr.hbm [resolvable:$true] %s1292_s13 }
  0x40   : > { %713 = vmatpush.bf16.msrb.mxu1 %v1473_v21  ;;  %681 = vmatpush.bf16.msra.mxu3 %v1025_v51  ;;  %v993_v25 = vor.u32 %v1111_v17, %v990_v20  ;;  %vm491_vm3 = vcmp.ne.s32.totalorder %v485_v56, 17  ;;  %s1294_s14 = scalar_lea.hbm %s1293_s13, 16  ;;  %p1299_p3 = scmp.lt.s32.totalorder %s1293_s13, %s1571_s4 }
  0x41   : > { %v985_v5 = vsel %vm491_vm3, 1.0, %v1354_v0  ;;  %p1295_p0 = scmp.ne.s32.totalorder %s1293_s13, %s1294_s14  ;;  %p1300_p4 = scmp.lt.s32.totalorder %s1298_s23, %s1294_s14 }
  0x42   : > { %696 = vmatpush.bf16.msrb.mxu0 %v1065_v29 }
  0x43   : > { %1137 = vmatpush.bf16.msrb.mxu2 %v1065_v29  ;;  %p1296_p1 = pnand %p1295_p0, %p1420_p5  ;;  %p1301_p7 = por %p1300_p4, %p1299_p3 }
  0x44   : > { %714 = vmatpush.bf16.msrb.mxu1 %v1476_v30  ;;  %682 = vmatpush.bf16.msra.mxu3 %v1013_v61 }
  0x45   : > { %p1297_p2 = pneg %p1296_p1 }
  0x46   : > { %697 = vmatpush.bf16.msrb.mxu0 %v1053_v38 }
  0x47   : > { %1138 = vmatpush.bf16.msrb.mxu2 %v1053_v38  ;;  %p1302_p8 = pnand %p1301_p7, %p1297_p2 }
  0x48   : > { %715 = vmatpush.bf16.msrb.mxu1 %v1479_v39  ;;  %683 = vmatpush.bf16.msra.mxu3 %v1001_v8 }
  0x4a   : > { %698 = vmatpush.bf16.msrb.mxu0 %v1041_v46 }
  0x4b   : > { %1139 = vmatpush.bf16.msrb.mxu2 %v1041_v46 }
  0x4c   : > { %716 = vmatpush.bf16.msrb.mxu1 %v1482_v48  ;;  %684 = vmatpush.bf16.msra.mxu3 %v989_v19 }
  0x4d   : > { %409 = vmatmul.bf16.gmra.mxu0 %v234_v12 }
  0x4e   : > { %445 = vmatmul.bf16.gmra.mxu2 %v234_v12  ;;  %699 = vmatpush.bf16.msrb.mxu0 %v1029_v55 }
  0x4f   : > { %427 = vmatmul.bf16.gmra.mxu1 %v234_v12  ;;  %1140 = vmatpush.bf16.msrb.mxu2 %v1029_v55  ;;  %v1116_v12 = vld [vmem:[#allocation5 + $0x28] sm:$0xf0] }
  0x50   : > { %717 = vmatpush.bf16.msrb.mxu1 %v1485_v57  ;;  %v1491_v14 = vor.u32 %v1116_v12, %v1008_v10  ;;  %1144 = vmatpush.bf16.msrb.mxu3 %v1473_v21 }
  0x52   : > { %700 = vmatpush.bf16.msrb.mxu0 %v1017_v1 }
  0x53   : > { %1141 = vmatpush.bf16.msrb.mxu2 %v1017_v1  ;;  %v984_v1 = vsel %vm486_vm2, 1.0, %v1354_v0 }
  0x54   : > { %718 = vmatpush.bf16.msrb.mxu1 %v1488_v2  ;;  %1145 = vmatpush.bf16.msrb.mxu3 %v1476_v30 }
  0x56   : > { %701 = vmatpush.bf16.msrb.mxu0 %v1005_v13 }
  0x57   : > { %1142 = vmatpush.bf16.msrb.mxu2 %v1005_v13 }
  0x58   : > { %719 = vmatpush.bf16.msrb.mxu1 %v1491_v14  ;;  %1146 = vmatpush.bf16.msrb.mxu3 %v1479_v39 }
  0x5a   : > { %702 = vmatpush.bf16.msrb.mxu0 %v993_v25 }
  0x5b   : > { %1143 = vmatpush.bf16.msrb.mxu2 %v993_v25 }
  0x5c   : > { %720 = vmatpush.bf16.msrb.mxu1 %v997_v26  ;;  %1147 = vmatpush.bf16.msrb.mxu3 %v1482_v48 }
  0x60   : > { %1148 = vmatpush.bf16.msrb.mxu3 %v1485_v57 }
  0x64   : > { %1149 = vmatpush.bf16.msrb.mxu3 %v1488_v2 }
  0x68   : > { %1150 = vmatpush.bf16.msrb.mxu3 %v1491_v14 }
  0x6c   : > { %1151 = vmatpush.bf16.msrb.mxu3 %v997_v26  ;;  %v761_v26 = vperm.slane %v1501_v33, 2 }
  0xba   : > { %v405_v18 = vpop.f32.mrf.mxu0 }
  0xbb   : > { %v454_v28 = vrot.slane %v405_v18, 7 }
  0xbc   : > { %v423_v24 = vpop.f32.mrf.mxu1 }
  0xbd   : > { %v462_v32 = vsel %vm453_vm0, 0.0, %v454_v28 }
  0xbe   : > { %v463_v34 = vadd.f32 %v462_v32, %v423_v24 }
  0xc1   : > { %v441_v27 = vpop.f32.mrf.mxu2 }
  0xc2   : > { %v407_v29 = vpop.f32.mrf.mxu0  ;;  %v470_v35 = vrot.slane %v441_v27, 1 }
  0xc3   : > { %v455_v40 = vrot.slane %v407_v29, 7  ;;  %v765_v29 = vperm.slane %v1501_v33, 3 }
  0xc4   : > { %v425_v31 = vpop.f32.mrf.mxu1 }
  0xc5   : > { %v456_v46 = vsel %vm453_vm0, %v454_v28, %v455_v40 }
  0xc6   : > { %v464_v52 = vadd.f32 %v456_v46, %v425_v31 }
  0xc9   : > { %v443_v21 = vpop.f32.mrf.mxu2 }
  0xca   : > { %v471_v30 = vrot.slane %v443_v21, 1  ;;  %v410_v36 = vpop.f32.mrf.mxu0 }
  0xcb   : > { %v457_v41 = vrot.slane %v410_v36, 7 }
  0xcc   : > { %v428_v38 = vpop.f32.mrf.mxu1  ;;  %v472_v39 = vsel %vm469_vm1, %v470_v35, %v471_v30 }
  0xcd   : > { %v479_v42 = vadd.f32 %v472_v39, %v463_v34  ;;  %v458_v47 = vsel %vm453_vm0, %v455_v40, %v457_v41 }
  0xce   : > { %v465_v53 = vadd.f32 %v458_v47, %v428_v38 }
  0xcf   : > { %v502_v44 = vmul.f32 %v501_v37, %v479_v42 }
  0xd1   : > { %v446_v48 = vpop.f32.mrf.mxu2  ;;  %v506_v54 = vadd.f32 %v505_v45, %v502_v44 }
  0xd2   : > { %v473_v50 = vrot.slane %v446_v48, 1  ;;  %v412_v51 = vpop.f32.mrf.mxu0 }
  0xd3   : > { %v509_v63 = vmax.f32 %v506_v54, 0.0 }
  0xd4   : > { %v430_v55 = vpop.f32.mrf.mxu1  ;;  %v474_v57 = vsel %vm469_vm1, %v471_v30, %v473_v50  ;;  %v478_v58 = vsel %vm453_vm0, %v473_v50, 0.0 }
  0xd5   : > { %v480_v59 = vadd.f32 %v474_v57, %v464_v52  ;;  %v481_v60 = vadd.f32 %v478_v58, %v465_v53  ;;  %v512_v9 = vmul.f32 %v984_v1, %v509_v63 }
  0xd7   : > { %v503_v61 = vmul.f32 %v501_v37, %v480_v59  ;;  %v504_v62 = vmul.f32 %v501_v37, %v481_v60 }
  0xd9   : > { %v448_v2 = vpop.f32.mrf.mxu2  ;;  %v507_v3 = vadd.f32 %v505_v45, %v503_v61  ;;  %v508_v4 = vadd.f32 %v505_v45, %v504_v62 }
  0xdb   : > { %v510_v8 = vmax.f32 %v507_v3, 0.0  ;;  %v511_v10 = vmax.f32 %v508_v4, 0.0 }
  0xdd   : > { %v515_v12 = vpack.c.bf16 %v510_v8, %v512_v9  ;;  %v514_v13 = vmul.f32 %v985_v5, %v511_v10 }
  0xdf   : > { %685 = vmatmul.bf16.vlgmr.msra.gmra.mxu3 %v515_v12  ;;  %703 = vmatmul.bf16.vlgmr.msrb.gmra.mxu0 %v515_v12  ;;  %v516_v15 = vpack.c.bf16 %v514_v13, %v514_v13 }
  0xe0   : > { %721 = vmatmul.bf16.vlgmr.msrb.gmra.mxu1 %v515_v12 }
  0xe1   : > { %708 = vmatmul.bf16.vlgmr.msrb.gmra.mxu2 %v516_v15 }
  0xef   : > { %690 = vmatmul.bf16.gmra.mxu3 %v516_v15 }
  0xff   : > { %726 = vmatmul.bf16.vlgmr.msrb.gmra.mxu3 %v516_v15 }
 0x15c   : > { %v704_v19 = vpop.f32.mrf.mxu0 }
 0x15d   : > { %v722_v14 = vpop.f32.mrf.mxu1 }
 0x15e   : > { %v749_v23 = vrot.slane %v722_v14, 1 }
 0x162   : > { %v686_v16 = vpop.f32.mrf.mxu3 }
 0x163   : > { %v734_v17 = vrot.slane %v686_v16, 7 }
 0x164   : > { %v709_v18 = vpop.f32.mrf.mxu2  ;;  %v706_v42 = vpop.f32.mrf.mxu0 }
 0x165   : > { %v742_v20 = vsel %vm453_vm0, 0.0, %v734_v17  ;;  %v724_v22 = vpop.f32.mrf.mxu1 }
 0x166   : > { %v743_v24 = vadd.f32 %v742_v20, %v704_v19  ;;  %v750_v25 = vrot.slane %v724_v22, 1 }
 0x168   : > { %v751_v27 = vsel %vm469_vm1, %v749_v23, %v750_v25 }
 0x169   : > { %v758_v28 = vadd.f32 %v751_v27, %v743_v24 }
 0x16a   : > { %v688_v31 = vpop.f32.mrf.mxu3 }
 0x16b   : > { %v762_v32 = vmul.f32 %v761_v26, %v758_v28  ;;  %v735_v38 = vrot.slane %v688_v31, 7 }
 0x16c   : > { %v711_v34 = vpop.f32.mrf.mxu2 }
 0x16d   : > { %v766_v21 = vadd.f32 %v765_v29, %v762_v32  ;;  %v736_v33 = vsel %vm453_vm0, %v734_v17, %v735_v38 }
 0x16e   : > { %v744_v44 = vadd.f32 %v736_v33, %v706_v42 }
 0x16f   : > { %v769_v35 = vadd.f32 %v766_v21, %v1463_v6 }
 0x171   : > { %v772_v30 = vmax.f32 %v769_v35, 0.0 }
 0x172   : > { %v691_v36 = vpop.f32.mrf.mxu3 }
 0x173   : > { %775 = vst [vmem:[%s1522_s6 - $0x1] sm:$0xfe] %v772_v30  ;;  %v737_v40 = vrot.slane %v691_v36, 7 }
 0x175   : > { %v738_v39 = vsel %vm453_vm0, %v735_v38, %v737_v40 }
 0x176   : > { %v745_v6 = vadd.f32 %v738_v39, %v709_v18 }
 0x17a   : > { %v693_v37 = vpop.f32.mrf.mxu3 }
 0x182   : > { %v727_v41 = vpop.f32.mrf.mxu3 }
 0x183   : > { %v752_v43 = vrot.slane %v727_v41, 1 }
 0x185   : > { %v753_v45 = vsel %vm469_vm1, %v750_v25, %v752_v43  ;;  %v757_v46 = vsel %vm453_vm0, %v752_v43, 0.0 }
 0x186   : > { %v759_v47 = vadd.f32 %v753_v45, %v744_v44  ;;  %v760_v48 = vadd.f32 %v757_v46, %v745_v6 }
 0x188   : > { %v763_v49 = vmul.f32 %v761_v26, %v759_v47  ;;  %v764_v50 = vmul.f32 %v761_v26, %v760_v48 }
 0x18a   : > { %v767_v51 = vadd.f32 %v765_v29, %v763_v49  ;;  %v768_v52 = vadd.f32 %v765_v29, %v764_v50  ;;  %v729_v53 = vpop.f32.mrf.mxu3 }
 0x18c   : > { %v770_v54 = vadd.f32 %v767_v51, %v1465_v7  ;;  %v771_v55 = vadd.f32 %v768_v52, %v1469_v11 }
 0x18e   : > { %v773_v56 = vmax.f32 %v770_v54, 0.0  ;;  %v774_v57 = vmax.f32 %v771_v55, 0.0 }
 0x190   : > { %776 = vst [vmem:[%s1522_s6 + $0x7] sm:$0xff] %v773_v56 }
 0x191   : > { %777 = vst [vmem:[%s1522_s6 + $0xf] sm:$0x1] %v774_v57 }
 0x192   : > { %1305 = shalt.err (!%p1302_p8)
}
 0x193   : > { %s1355_s29 = smov 128   ;;  %s1356_s30 = smov 8  }
 0x194   : > { %1161 = dma.vmem_to_hbm [thread:$0]  (%p1420_p5), %s792_s11, 256, %s794_s12, %s779_s19, %s1355_s29, %s1355_s29, %s1356_s30  }
 0x195 PF: > { %p1178_p9 = scmp.ge.s32.totalorder %s1348_s18, 2  ;;  %s808_s5 = sand.u32 1, %s1336_s15  }
 0x196   : > { %s809_s6 = scalar_lea.sflag [#allocation4], %s808_s5 }
 0x197   : > { %p1171_p10 = pnand %p1178_p9, %p1424_p6 }
 0x199   : > { %p1172_p11 = pneg %p1171_p10 }
 0x19b   : > { %1331 = dma.done.wait (%p1172_p11), %s809_s6, 256  }
 0x19c   : > { %1333 = vsyncadd (%p1172_p11), %s809_s6, 4294967040  ;;  %p16_p12 = scmp.ge.s32.totalorder %s1407_s21, 4   ;;  %s1575_s15 = smov %s1340_s16 }
 0x19d   : > { %s1576_s16 = smov %s1344_s17  ;;  %s1577_s17 = smov %s1418_s24 }
 0x19e   : > { %s1578_s18 = smov %s1407_s21  ;;  %18 = sbr.rel (!%p16_p12) target bundleno = 5 (0x5), region = 80 }
 0x1a3   :  { %815 = vsyncpa [#allocation3], 1 }
 0x1a4   :  { %817 = vsyncpa [#allocation3 + $0x1], 1 }
 0x1a5   :  { %818 = vsyncpa [#allocation6], 1 }
 0x1a6   :  { %819 = vsyncpa [#allocation4], 1 }
 0x1a7   :  { %821 = vsyncpa [#allocation4 + $0x1], 1 }

</bundles_post_ra>
